<compile_context>
chip_gen: v6e
topology: v6e:2x2x1
jax: 0.10.0
libtpu: 0.0.40
codegen_flags: <defaults>
</compile_context>

<pallas_src>
import jax
import jax.numpy as jnp
import numpy as np
from jax.experimental import pallas as pl
from jax.experimental.pallas import tpu as pltpu


def _round_up(n, m):
    return ((n + m - 1) // m) * m


def _critic_kernel(sa_ref, w1_ref, b1_ref, w2h_ref, w2a_ref, b2_ref,
                   w3_ref, b3_ref, out_ref):
    sa = sa_ref[...]                                   # [bt, S+A] bf16
    # fc1 + relu.  w1_ref's action rows are zero, so this is exactly
    # state @ W1^T:   [bt, S+A] @ [S+A, H1p] -> [bt, H1p]  (f32 accumulation)
    h1 = jnp.dot(sa, w1_ref[...], preferred_element_type=jnp.float32)
    h1 = jnp.maximum(h1 + b1_ref[...], 0.0)
    # layer 2 (cat([h1, action]) @ W2^T) as a split matmul; w2a_ref's state rows
    # are zero so  sa @ w2a_ref == action @ W2a  exactly.
    h2 = jnp.dot(h1.astype(jnp.bfloat16), w2h_ref[...],
                 preferred_element_type=jnp.float32)
    h2 = h2 + jnp.dot(sa, w2a_ref[...], preferred_element_type=jnp.float32)
    h2 = jnp.maximum(h2 + b2_ref[...], 0.0)
    # Output head: contract the single w3 row against h2's feature axis, which
    # directly yields the lane-dense (1, bt) output block (batch on lanes).
    q = jax.lax.dot_general(w3_ref[...], h2.astype(jnp.bfloat16),
                            dimension_numbers=(((1,), (1,)), ((), ())),
                            preferred_element_type=jnp.float32)
    out_ref[...] = q + b3_ref[...]


def _default_batch_tile(B, max_tile=4096):
    # <=2 balanced grid steps when possible: keeps both v7x TensorCores busy
    # (dimension_semantics parallel) and minimizes per-step overhead on
    # single-TC v5e/v6e.  Always a multiple of 128 so the output stays
    # lane-dense; capped so VMEM stays comfortable on every generation.
    if B <= 128:
        return 128
    return min(_round_up(-(-B // 2), 128), max_tile)


def critic_forward(state, action, params, *, batch_tile=None):
    """Fused Critic forward. state: [B, S], action: [B, A] -> Q: [B, 1]."""
    B, S = state.shape
    A = action.shape[1]
    w1_sa, b1, w2h, w2a_sa, b2, w3, b3 = params
    SA = S + A
    H1p = w1_sa.shape[1]
    H2p = w2h.shape[1]
    assert w1_sa.shape[0] == SA and w2a_sa.shape[0] == SA

    if batch_tile is None:
        batch_tile = _default_batch_tile(B)
    assert batch_tile % 128 == 0, "keep the output lane-dense (multiple of 128)"
    num_tiles = pl.cdiv(B, batch_tile)

    # Single streamed operand: fused (state | action) cast to bf16.  The concat
    # and the down-cast fuse into one XLA pass over the inputs; no whole-batch
    # zero-pad pass is needed (ragged tail handled by Pallas boundary blocks).
    sa = jnp.concatenate([state, action], axis=1).astype(jnp.bfloat16)

    full = lambda shape: pl.BlockSpec(shape, lambda i: (0, 0))

    flops = 2 * B * (SA * H1p + H1p * H2p + SA * H2p + H2p)
    bytes_accessed = (B * SA * 2 + B * 4                              # sa in, Q out
                      + (SA * H1p + H1p * H2p + SA * H2p + H2p) * 2   # bf16 weights
                      + (H1p + H2p + 1) * 4)                          # f32 biases

    out_row = pl.pallas_call(
        _critic_kernel,
        out_shape=jax.ShapeDtypeStruct((1, B), jnp.float32),
        grid_spec=pltpu.PrefetchScalarGridSpec(
            num_scalar_prefetch=0,
            grid=(num_tiles,),
            in_specs=[
                pl.BlockSpec((batch_tile, SA), lambda i: (i, 0)),  # streamed sa tile
                full((SA, H1p)),     # W1^T, zero action rows (bf16, resident)
                full((1, H1p)),      # b1  (f32)
                full((H1p, H2p)),    # W2^T hidden half (bf16, resident)
                full((SA, H2p)),     # W2^T action half, zero state rows (bf16)
                full((1, H2p)),      # b2  (f32)
                full((1, H2p)),      # w3 row (bf16)
                full((1, 1)),        # b3  (f32)
            ],
            # Lane-dense output: batch on the 128-lane axis -> full-width stores
            # (only the ragged tail block is masked).
            out_specs=pl.BlockSpec((1, batch_tile), lambda i: (0, i)),
        ),
        compiler_params=pltpu.CompilerParams(
            dimension_semantics=("parallel",)),   # shards batch tiles across v7x TCs
        cost_estimate=pl.CostEstimate(flops=flops, transcendentals=0,
                                      bytes_accessed=bytes_accessed),
    )(sa, w1_sa, b1, w2h, w2a_sa, b2, w3, b3)

    # (1, B) row -> (B, 1) column (same element order).
    return out_row.reshape(B, 1)


def init_critic_params(key, state_size, action_size, fc_units):
    """Deterministic init mirroring the PyTorch module's reset_parameters()."""
    H1, H2 = fc_units
    S, A = state_size, action_size
    ks = jax.random.split(key, 6)

    def uni(k, shape, lim):
        return jax.random.uniform(k, shape, jnp.float32, -lim, lim)

    # hidden_init in the reference uses weight.size()[0] == out_features.
    lim1 = 1.0 / np.sqrt(H1)
    lim2 = 1.0 / np.sqrt(H2)
    w1 = uni(ks[0], (H1, S), lim1)                    # PyTorch layout [out, in]
    b1 = uni(ks[1], (H1,), 1.0 / np.sqrt(S))          # nn.Linear default bias init
    w2 = uni(ks[2], (H2, H1 + A), lim2)
    b2 = uni(ks[3], (H2,), 1.0 / np.sqrt(H1 + A))
    w3 = uni(ks[4], (1, H2), 0.003)
    b3 = uni(ks[5], (1,), 1.0 / np.sqrt(H2))
    torch_params = (w1, b1, w2, b2, w3, b3)

    # Pre-transpose, split the concat layer, zero-pad hidden widths to 128-lane
    # multiples and input widths to S+A rows (all padding is exactly zero, so
    # the padded channels/rows contribute nothing), then cast weights to bf16.
    H1p = max(128, _round_up(H1, 128))
    H2p = max(128, _round_up(H2, 128))
    SA = S + A

    def pad_to(x, axis, target):
        p = target - x.shape[axis]
        if p == 0:
            return x
        widths = [(0, 0)] * x.ndim
        widths[axis] = (0, p)
        return jnp.pad(x, widths)

    bf16 = jnp.bfloat16
    # fc1, consuming the fused (state|action) tile: action rows are zero.
    w1_sa = pad_to(pad_to(w1.T, 0, SA), 1, H1p).astype(bf16)          # (SA, H1p)
    b1_r = pad_to(b1.reshape(1, H1), 1, H1p)                          # (1, H1p) f32
    # layer 2 split: hidden half + action half (state rows of the latter zero).
    w2h = pad_to(pad_to(w2[:, :H1].T, 0, H1p), 1, H2p).astype(bf16)   # (H1p, H2p)
    w2a = w2[:, H1:].T                                                # (A, H2)
    w2a_sa = (jnp.zeros((SA, H2p), jnp.float32)
              .at[S:, :H2].set(w2a).astype(bf16))                     # (SA, H2p)
    b2_r = pad_to(b2.reshape(1, H2), 1, H2p)                          # (1, H2p) f32
    w3_r = pad_to(w3, 1, H2p).astype(bf16)                            # (1, H2p)
    b3_r = b3.reshape(1, 1)                                           # (1, 1) f32

    kernel_params = (w1_sa, b1_r, w2h, w2a_sa, b2_r, w3_r, b3_r)
    return kernel_params, torch_params


def critic_ref(state, action, torch_params):
    """Pure-JAX f32 reference reproducing the PyTorch forward exactly."""
    w1, b1, w2, b2, w3, b3 = torch_params
    x = jax.nn.relu(state @ w1.T + b1)
    x = jnp.concatenate([x, action], axis=1)
    x = jax.nn.relu(x @ w2.T + b2)
    return x @ w3.T + b3


if __name__ == "__main__":
    key = jax.random.PRNGKey(0)
    # Small shapes.  Ragged B=300 exercises the no-pad boundary-block path and
    # yields two balanced 256-row tiles (one per v7x TensorCore; two cheap
    # steps on single-TC v5e/v6e).
    B, S, A = 300, 32, 8
    fc_units = [128, 64]   # H2=64 is zero-padded to 128 lanes inside init

    k_p, k_s, k_a = jax.random.split(key, 3)
    kernel_params, torch_params = init_critic_params(k_p, S, A, fc_units)
    state = jax.random.normal(k_s, (B, S), jnp.float32)
    action = jax.random.normal(k_a, (B, A), jnp.float32)

    out = critic_forward(state, action, kernel_params)
    out = jax.block_until_ready(out)

    ref = critic_ref(state, action, torch_params)
    assert out.shape == (B, 1)
    # bf16 operands with f32 accumulation: tolerance relaxed vs the f32 reference.
    np.testing.assert_allclose(np.asarray(out), np.asarray(ref), rtol=2e-2, atol=2e-2)
    print("KERNEL_OK")
</pallas_src>

<mosaic_0001>
module attributes {stable_mosaic.version = 11 : i64} {
  func.func @_critic_kernel(%arg0: i32, %arg1: memref<256x40xbf16, #tpu.memory_space<vmem>>, %arg2: memref<40x128xbf16, #tpu.memory_space<vmem>>, %arg3: memref<1x128xf32, #tpu.memory_space<vmem>>, %arg4: memref<128x128xbf16, #tpu.memory_space<vmem>>, %arg5: memref<40x128xbf16, #tpu.memory_space<vmem>>, %arg6: memref<1x128xf32, #tpu.memory_space<vmem>>, %arg7: memref<1x128xbf16, #tpu.memory_space<vmem>>, %arg8: memref<1x1xf32, #tpu.memory_space<vmem>>, %arg9: memref<1x256xf32, #tpu.memory_space<vmem>>) attributes {dimension_semantics = [#tpu.dimension_semantics<parallel>], iteration_bounds = array<i64: 2>, scalar_prefetch = 0 : i64, scratch_operands = 0 : i64, tpu.core_type = #tpu.core_type<tc>, window_params = [{transform_indices = @transform_0, window_bounds = array<i64: 256, 40>}, {pipeline_mode = #tpu.pipeline_mode<synchronous>, transform_indices = @transform_1, window_bounds = array<i64: 40, 128>}, {pipeline_mode = #tpu.pipeline_mode<synchronous>, transform_indices = @transform_2, window_bounds = array<i64: 1, 128>}, {pipeline_mode = #tpu.pipeline_mode<synchronous>, transform_indices = @transform_3, window_bounds = array<i64: 128, 128>}, {pipeline_mode = #tpu.pipeline_mode<synchronous>, transform_indices = @transform_4, window_bounds = array<i64: 40, 128>}, {pipeline_mode = #tpu.pipeline_mode<synchronous>, transform_indices = @transform_5, window_bounds = array<i64: 1, 128>}, {pipeline_mode = #tpu.pipeline_mode<synchronous>, transform_indices = @transform_6, window_bounds = array<i64: 1, 128>}, {pipeline_mode = #tpu.pipeline_mode<synchronous>, transform_indices = @transform_7, window_bounds = array<i64: 1, 1>}, {transform_indices = @transform_8, window_bounds = array<i64: 1, 256>}]} {
    %c0 = arith.constant 0 : index
    %c0_0 = arith.constant 0 : index
    %0 = vector.load %arg1[%c0, %c0_0] : memref<256x40xbf16, #tpu.memory_space<vmem>>, vector<256x40xbf16>
    %c0_1 = arith.constant 0 : index
    %c0_2 = arith.constant 0 : index
    %1 = vector.load %arg2[%c0_1, %c0_2] : memref<40x128xbf16, #tpu.memory_space<vmem>>, vector<40x128xbf16>
    %cst = arith.constant dense<0.000000e+00> : vector<256x128xf32>
    %2 = tpu.matmul %0, %1, %cst {dimension_numbers = #tpu.dot_dimension_numbers<[1], [0], [0], [1], [0, 0, 1, 1], [], []>} : vector<256x40xbf16>, vector<40x128xbf16>, vector<256x128xf32> -> vector<256x128xf32>
    %c0_3 = arith.constant 0 : index
    %c0_4 = arith.constant 0 : index
    %3 = vector.load %arg3[%c0_3, %c0_4] : memref<1x128xf32, #tpu.memory_space<vmem>>, vector<1x128xf32>
    %4 = vector.broadcast %3 : vector<1x128xf32> to vector<256x128xf32>
    %5 = arith.addf %2, %4 : vector<256x128xf32>
    %cst_5 = arith.constant 0.000000e+00 : f32
    %6 = vector.broadcast %cst_5 : f32 to vector<256x128xf32>
    %7 = arith.maximumf %5, %6 : vector<256x128xf32>
    %8 = arith.truncf %7 : vector<256x128xf32> to vector<256x128xbf16>
    %c0_6 = arith.constant 0 : index
    %c0_7 = arith.constant 0 : index
    %9 = vector.load %arg4[%c0_6, %c0_7] : memref<128x128xbf16, #tpu.memory_space<vmem>>, vector<128x128xbf16>
    %cst_8 = arith.constant dense<0.000000e+00> : vector<256x128xf32>
    %10 = tpu.matmul %8, %9, %cst_8 {dimension_numbers = #tpu.dot_dimension_numbers<[1], [0], [0], [1], [0, 0, 1, 1], [], []>} : vector<256x128xbf16>, vector<128x128xbf16>, vector<256x128xf32> -> vector<256x128xf32>
    %c0_9 = arith.constant 0 : index
    %c0_10 = arith.constant 0 : index
    %11 = vector.load %arg5[%c0_9, %c0_10] : memref<40x128xbf16, #tpu.memory_space<vmem>>, vector<40x128xbf16>
    %cst_11 = arith.constant dense<0.000000e+00> : vector<256x128xf32>
    %12 = tpu.matmul %0, %11, %cst_11 {dimension_numbers = #tpu.dot_dimension_numbers<[1], [0], [0], [1], [0, 0, 1, 1], [], []>} : vector<256x40xbf16>, vector<40x128xbf16>, vector<256x128xf32> -> vector<256x128xf32>
    %13 = arith.addf %10, %12 : vector<256x128xf32>
    %c0_12 = arith.constant 0 : index
    %c0_13 = arith.constant 0 : index
    %14 = vector.load %arg6[%c0_12, %c0_13] : memref<1x128xf32, #tpu.memory_space<vmem>>, vector<1x128xf32>
    %15 = vector.broadcast %14 : vector<1x128xf32> to vector<256x128xf32>
    %16 = arith.addf %13, %15 : vector<256x128xf32>
    %cst_14 = arith.constant 0.000000e+00 : f32
    %17 = vector.broadcast %cst_14 : f32 to vector<256x128xf32>
    %18 = arith.maximumf %16, %17 : vector<256x128xf32>
    %c0_15 = arith.constant 0 : index
    %c0_16 = arith.constant 0 : index
    %19 = vector.load %arg7[%c0_15, %c0_16] : memref<1x128xbf16, #tpu.memory_space<vmem>>, vector<1x128xbf16>
    %20 = arith.truncf %18 : vector<256x128xf32> to vector<256x128xbf16>
    %cst_17 = arith.constant dense<0.000000e+00> : vector<1x256xf32>
    %21 = tpu.matmul %19, %20, %cst_17 {dimension_numbers = #tpu.dot_dimension_numbers<[1], [1], [0], [0], [0, 0, 1, 0], [], []>} : vector<1x128xbf16>, vector<256x128xbf16>, vector<1x256xf32> -> vector<1x256xf32>
    %c0_18 = arith.constant 0 : index
    %c0_19 = arith.constant 0 : index
    %22 = vector.load %arg8[%c0_18, %c0_19] : memref<1x1xf32, #tpu.memory_space<vmem>>, vector<1x1xf32>
    %23 = vector.broadcast %22 : vector<1x1xf32> to vector<1x256xf32>
    %24 = arith.addf %21, %23 : vector<1x256xf32>
    %c0_20 = arith.constant 0 : index
    %c0_21 = arith.constant 0 : index
    %25 = vector.load %arg9[%c0_20, %c0_21] : memref<1x256xf32, #tpu.memory_space<vmem>>, vector<1x256xf32>
    tpu.vector_store %arg9[%c0_20, %c0_21], %24 {strides = array<i32>} : memref<1x256xf32, #tpu.memory_space<vmem>>, vector<1x256xf32>,
    return
  }
  func.func @transform_0(%arg0: i32) -> (i32, i32) {
    %c0_i32 = arith.constant 0 : i32
    %c0_i32_0 = arith.constant 0 : i32
    return %arg0, %c0_i32 : i32, i32
  }
  func.func @transform_1(%arg0: i32) -> (i32, i32) {
    %c0_i32 = arith.constant 0 : i32
    %c0_i32_0 = arith.constant 0 : i32
    %c0_i32_1 = arith.constant 0 : i32
    return %c0_i32, %c0_i32_0 : i32, i32
  }
  func.func @transform_2(%arg0: i32) -> (i32, i32) {
    %c0_i32 = arith.constant 0 : i32
    %c0_i32_0 = arith.constant 0 : i32
    %c0_i32_1 = arith.constant 0 : i32
    return %c0_i32, %c0_i32_0 : i32, i32
  }
  func.func @transform_3(%arg0: i32) -> (i32, i32) {
    %c0_i32 = arith.constant 0 : i32
    %c0_i32_0 = arith.constant 0 : i32
    %c0_i32_1 = arith.constant 0 : i32
    return %c0_i32, %c0_i32_0 : i32, i32
  }
  func.func @transform_4(%arg0: i32) -> (i32, i32) {
    %c0_i32 = arith.constant 0 : i32
    %c0_i32_0 = arith.constant 0 : i32
    %c0_i32_1 = arith.constant 0 : i32
    return %c0_i32, %c0_i32_0 : i32, i32
  }
  func.func @transform_5(%arg0: i32) -> (i32, i32) {
    %c0_i32 = arith.constant 0 : i32
    %c0_i32_0 = arith.constant 0 : i32
    %c0_i32_1 = arith.constant 0 : i32
    return %c0_i32, %c0_i32_0 : i32, i32
  }
  func.func @transform_6(%arg0: i32) -> (i32, i32) {
    %c0_i32 = arith.constant 0 : i32
    %c0_i32_0 = arith.constant 0 : i32
    %c0_i32_1 = arith.constant 0 : i32
    return %c0_i32, %c0_i32_0 : i32, i32
  }
  func.func @transform_7(%arg0: i32) -> (i32, i32) {
    %c0_i32 = arith.constant 0 : i32
    %c0_i32_0 = arith.constant 0 : i32
    %c0_i32_1 = arith.constant 0 : i32
    return %c0_i32, %c0_i32_0 : i32, i32
  }
  func.func @transform_8(%arg0: i32) -> (i32, i32) {
    %c0_i32 = arith.constant 0 : i32
    %c0_i32_0 = arith.constant 0 : i32
    return %c0_i32, %arg0 : i32, i32
  }
}

</mosaic_0001>

<bundles_post_ra>
// kernel: tpu_custom_call.1
= control target key start
LH: loop header
LB: loop body
LE: loop exit
PB: predicated region body
PF: predicated region fallthrough
CT: control target
= control target key end

     0   :  { %s2240_s0 = inlined_call_operand.vmem [shape: bf16[300,40], index: 0, kind: input, shape index: {}]   ;;  %s2241_s1 = inlined_call_operand.vmem [shape: bf16[40,128], index: 1, kind: input, shape index: {}]   ;;  %s2242_s2 = inlined_call_operand.vmem [shape: f32[1,128], index: 2, kind: input, shape index: {}]   ;;  %s2243_s3 = inlined_call_operand.vmem [shape: bf16[128,128], index: 3, kind: input, shape index: {}]   ;;  %s2244_s4 = inlined_call_operand.vmem [shape: bf16[40,128], index: 4, kind: input, shape index: {}]   ;;  %s2245_s5 = inlined_call_operand.vmem [shape: f32[1,128], index: 5, kind: input, shape index: {}]   ;;  %s2246_s6 = inlined_call_operand.vmem [shape: bf16[1,128], index: 6, kind: input, shape index: {}]   ;;  %s2247_s7 = inlined_call_operand.<no memory space> [shape: f32[1,1], index: 7, kind: input, shape index: {}]   ;;  %s2248_s8 = inlined_call_operand.hbm [shape: f32[1,300], index: 8, kind: output, shape index: {}]  }
   0x1   :  { %v13_v0 = vstv %s2247_s7 }
   0x2   :  { %14 = vst [vmem:[#allocation2] sm:$0x1] %v13_v0 }
   0x3   :  { %15 = vsyncpa [#allocation4], 0 }
   0x4   :  { %17 = vsyncpa [#allocation4 + $0x1], 0  ;;  %s1861_s29 = smov 0   ;;  %s1863_s30 = smov 0  }
   0x5   :  { %s1865_s9 = smov 0   ;;  %s1867_s10 = smov 0  }
   0x6 LB: > { %s1882_s7 = sadd.s32 4294967295, %s1808_s10   ;;  %s1385_s11 = sadd.s32 4294967294, %s1808_s10   ;;  %s1808_s10 = sphi %s1867_s10, %s2254_s10   ;;  %s1804_s9 = sphi %s1865_s9, %s2253_s9   ;;  %s1800_s30 = sphi %s1863_s30, %s2252_s30   ;;  %s1796_s29 = sphi %s1861_s29, %s2251_s29  }
   0x7   : > { %s1886_s12 = sadd.s32 1, %s1808_s10   ;;  %s203_s13 = sadd.s32 1, %s1804_s9 }
   0x8   : > { %s200_s14 = ssub.s32 %s1808_s10, %s1886_s12  ;;  %p213_p0 = scmp.ne.s32.totalorder %s1804_s9, %s1800_s30 }
   0x9   : > { %p201_p1 = scmp.eq.s32.totalorder %s200_s14, 0  ;;  %p214_p2 = scmp.eq.s32.totalorder %s1882_s7, 1 }
   0xa   : > { %p219_p3 = scmp.ne.s32.totalorder %s1800_s30, %s1796_s29  ;;  %p220_p4 = scmp.eq.s32.totalorder %s1385_s11, 1 }
   0xb   : > { %s1897_s15 = scalar_select %p201_p1, %s1804_s9, %s203_s13  }
   0xc   : > { %p1899_p5 = por %p214_p2, %p213_p0  ;;  %p1903_p6 = por %p220_p4, %p219_p3 }
   0xd   : > { %p1388_p7 = scmp.ge.s32.totalorder %s1808_s10, 1  ;;  %p276_p8 = scmp.lt.s32.totalorder %s1808_s10, 3 }
   0xf   : > { %p277_p9 = pnand %p1388_p7, %p276_p8 }
  0x10   : > { %s1918_s22 = sshll.u32 (!%p277_p9), %s1882_s7, 5  ;;  %s311_s19 = sand.u32 (!%p277_p9), 1, %s1800_s30  }
  0x11   : > { %280 = sbr.rel (%p277_p9) target bundleno = 796 (0x31c), region = 52  ;;  %p319_p10 = scmp.lt.s32.totalorder (!%p277_p9), %s1918_s22, 37 }
  0x12   : > { %s1389_s20 = sshll.u32 (!%p277_p9), %s311_s19, 1  ;;  %s2193_s23 = scalar_lea.sflag (!%p277_p9), [#allocation4], %s311_s19 }
  0x13   : > { %s313_s21 = scalar_lea.vmem (!%p277_p9), [#allocation3], %s1389_s20 }
  0x16   : > { %v1718_v1 = vld [vmem:[%s2241_s1 + $0x10] ss:$0 sps:$4 sm:$0xff]   ;;  %vm522_vm0 = vcmask 1043456   ;;  %v1719_v2 = vld [vmem:[%s2241_s1 + $0x8] sm:$0xff]   ;;  %v1720_v4 = vld [vmem:[%s2241_s1] sm:$0xff]   ;;  %s320_s25 = scalar_select %p319_p10, %s1918_s22, 37 }
  0x17   : > { %1674 = vmatprep.subr.msk.bf16.mxu0 %vm522_vm0, %v1718_v1  ;;  %v524_v3 = vsel %vm522_vm0, %v1718_v1, 0  ;;  %1675 = vmatprep.subr.msk.bf16.mxu1 %vm522_vm0, %v1718_v1  ;;  %v1737_v5 = vld [vmem:[%s2244_s4 + $0x10] ss:$0 sps:$4 sm:$0xff]   ;;  %vm473_vm1 = vcmask 326656   ;;  %v1738_v6 = vld [vmem:[%s2243_s3 + $0x38] sm:$0xff]   ;;  %v1740_v11 = vld [vmem:[%s2243_s3 + $0x28] sm:$0xff]  }
  0x18   : > { %1545 = vmatpush3.bf16.msra.mxu0 %v524_v3  ;;  %1671 = vmatpush3.bf16.msra.mxu1 %v524_v3  ;;  %s1391_s26 = sshll.u32 %s320_s25, 2  ;;  %v1739_v10 = vld [vmem:[%s2243_s3 + $0x30] sm:$0xff]   ;;  %v1741_v13 = vld [vmem:[%s2244_s4 + $0x8] sm:$0xff]   ;;  %v772_v17 = vsel %vm522_vm0, %v1737_v5, 0  ;;  %v1742_v19 = vld [vmem:[%s2243_s3 + $0x20] sm:$0xff]   ;;  %s1457_s24 = sshll.u32 (%p1899_p5), %s1882_s7, 1 }
  0x19   : > { %1546 = vmatprep.subr.bf16.mxu0 %v1719_v2  ;;  %1669 = vmatprep.subr.bf16.mxu1 %v1719_v2  ;;  %s1932_s14 = scalar_lea.vmem %s2240_s0, %s1391_s26  ;;  %v1743_v24 = vld [vmem:[%s2243_s3 + $0x18] sm:$0xff]   ;;  %v1744_v29 = vld [vmem:[%s2243_s3 + $0x10] sm:$0xff]   ;;  %v1745_v30 = vld [vmem:[%s2244_s4] sm:$0xff]  }
  0x1a   : > { %v1721_v7 = vld [vmem:[%s1932_s14] sm:$0xff]   ;;  %v1939_v8 = vld [vmem:[%s1932_s14 + $0x8] sm:$0xff]   ;;  %v1723_v9 = vld [vmem:[%s1932_s14 + $0x10] sm:$0xff]  }
  0x1b   : > { %1550 = vmatprep.mubr.msk.bf16.mxu0 %vm473_vm1, %v1721_v7  ;;  %v1724_v12 = vld [vmem:[%s1932_s14 + $0x18] sm:$0xff]   ;;  %v1725_v14 = vld [vmem:[%s1932_s14 + $0x20] sm:$0xff]   ;;  %v1730_v16 = vld [vmem:[%s1932_s14 + $0x48] sm:$0xff]  }
  0x1c   : > { %1547 = vmatpush3.bf16.msra.mxu0 %v1719_v2  ;;  %1672 = vmatpush3.bf16.msra.mxu1 %v1719_v2  ;;  %v1729_v15 = vld [vmem:[%s1932_s14 + $0x40] sm:$0xff]   ;;  %v1731_v18 = vld [vmem:[%s1932_s14 + $0x50] sm:$0xff]   ;;  %v1732_v20 = vld [vmem:[%s1932_s14 + $0x58] sm:$0xff]  }
  0x1d   : > { %1548 = vmatprep.subr.bf16.mxu0 %v1720_v4  ;;  %1670 = vmatprep.subr.bf16.mxu1 %v1720_v4  ;;  %v1726_v21 = vld [vmem:[%s1932_s14 + $0x28] sm:$0xff]   ;;  %v1733_v22 = vld [vmem:[%s1932_s14 + $0x60] sm:$0xff]   ;;  %v1727_v23 = vld [vmem:[%s1932_s14 + $0x30] sm:$0xff]  }
  0x1e   : > { %1566 = vmatprep.mubr.msk.bf16.mxu1 %vm473_vm1, %v1729_v15  ;;  %v1734_v25 = vld [vmem:[%s1932_s14 + $0x68] sm:$0xff]   ;;  %v1735_v26 = vld [vmem:[%s1932_s14 + $0x70] sm:$0xff]   ;;  %v1728_v27 = vld [vmem:[%s1932_s14 + $0x38] sm:$0xff]  }
  0x1f   : > { %v1736_v28 = vld [vmem:[%s1932_s14 + $0x78] sm:$0xff]   ;;  %v1746_v31 = vld [vmem:[%s2243_s3 + $0x8] sm:$0xff]   ;;  %v1747_v32 = vld [vmem:[%s2243_s3] sm:$0xff]   ;;  %s1315_s14 = ssub.s32 (%p1899_p5), 3, %s1457_s24 }
  0x20   : > { %1549 = vmatpush3.bf16.msra.mxu0 %v1720_v4  ;;  %1673 = vmatpush3.bf16.msra.mxu1 %v1720_v4  ;;  %v2021_v35 = vld [vmem:[%s2242_s2] ss:$0 sm:$0xff]  ;;  %p1316_p11 = scmp.lt.s32.totalorder (%p1899_p5), %s1315_s14, 2 }
  0x21   : > { %1620 = vmatprep.subr.bf16.mxu0 %v1738_v6  ;;  %1676 = vmatprep.subr.msk.bf16.mxu1 %vm522_vm0, %v1737_v5 }
  0x23   : > { %1551 = vmatmul.mubr.msk.bf16.vlgmr.msra.gmra.mxu0 %vm473_vm1, %v1939_v8  ;;  %1567 = vmatmul.mubr.msk.bf16.vlgmr.msra.gmra.mxu1 %vm473_vm1, %v1730_v16 }
  0x24   : > { %1554 = vmatprep.mubr.msk.bf16.mxu0 %vm473_vm1, %v1723_v9  ;;  %1621 = vmatpush3.bf16.msra.mxu0 %v1738_v6 }
  0x25   : > { %1622 = vmatprep.subr.bf16.mxu0 %v1739_v10  ;;  %1570 = vmatprep.mubr.msk.bf16.mxu1 %vm473_vm1, %v1731_v18 }
  0x26   : > { %1583 = vmatpush3.bf16.msra.mxu1 %v772_v17 }
  0x27   : > { %1584 = vmatprep.subr.bf16.mxu1 %v1741_v13 }
  0x28   : > { %1623 = vmatpush3.bf16.msra.mxu0 %v1739_v10 }
  0x29   : > { %1624 = vmatprep.subr.bf16.mxu0 %v1740_v11 }
  0x2a   : > { %1585 = vmatpush3.bf16.msra.mxu1 %v1741_v13 }
  0x2b   : > { %1555 = vmatmul.mubr.msk.bf16.gmra.mxu0 %vm473_vm1, %v1724_v12  ;;  %1571 = vmatmul.mubr.msk.bf16.gmra.mxu1 %vm473_vm1, %v1732_v20 }
  0x2c   : > { %1558 = vmatprep.mubr.msk.bf16.mxu0 %vm473_vm1, %v1725_v14  ;;  %1625 = vmatpush3.bf16.msra.mxu0 %v1740_v11 }
  0x2d   : > { %1626 = vmatprep.subr.bf16.mxu0 %v1742_v19  ;;  %1574 = vmatprep.mubr.msk.bf16.mxu1 %vm473_vm1, %v1733_v22 }
  0x2e   : > { %1586 = vmatprep.subr.bf16.mxu1 %v1745_v30 }
  0x2f   : > { %1587 = vmatpush3.bf16.msra.mxu1 %v1745_v30 }
  0x30   : > { %1627 = vmatpush3.bf16.msra.mxu0 %v1742_v19 }
  0x31   : > { %1628 = vmatprep.subr.bf16.mxu0 %v1743_v24 }
  0x33   : > { %1559 = vmatmul.mubr.msk.bf16.gmra.mxu0 %vm473_vm1, %v1726_v21  ;;  %1575 = vmatmul.mubr.msk.bf16.gmra.mxu1 %vm473_vm1, %v1734_v25 }
  0x34   : > { %1562 = vmatprep.mubr.msk.bf16.mxu0 %vm473_vm1, %v1727_v23  ;;  %1629 = vmatpush3.bf16.msra.mxu0 %v1743_v24 }
  0x35   : > { %1578 = vmatprep.mubr.msk.bf16.mxu1 %vm473_vm1, %v1735_v26  ;;  %1630 = vmatprep.subr.bf16.mxu0 %v1744_v29 }
  0x38   : > { %1631 = vmatpush3.bf16.msra.mxu0 %v1744_v29 }
  0x39   : > { %1632 = vmatprep.subr.bf16.mxu0 %v1746_v31 }
  0x3b   : > { %1563 = vmatmul.mubr.msk.bf16.gmra.mxu0 %vm473_vm1, %v1728_v27  ;;  %1579 = vmatmul.mubr.msk.bf16.gmra.mxu1 %vm473_vm1, %v1736_v28 }
  0x3c   : > { %1588 = vmatprep.mubr.msk.bf16.mxu1 %vm473_vm1, %v1721_v7  ;;  %1633 = vmatpush3.bf16.msra.mxu0 %v1746_v31 }
  0x3d   : > { %1634 = vmatprep.subr.bf16.mxu0 %v1747_v32 }
  0x40   : > { %1635 = vmatpush3.bf16.msra.mxu0 %v1747_v32 }
  0x43   : > { %1589 = vmatmul.mubr.msk.bf16.vlgmr.msra.gmra.mxu1 %vm473_vm1, %v1939_v8 }
  0x44   : > { %1592 = vmatprep.mubr.msk.bf16.mxu1 %vm473_vm1, %v1723_v9 }
  0x4b   : > { %1593 = vmatmul.mubr.msk.bf16.gmra.mxu1 %vm473_vm1, %v1724_v12 }
  0x4c   : > { %1596 = vmatprep.mubr.msk.bf16.mxu1 %vm473_vm1, %v1725_v14 }
  0x53   : > { %1597 = vmatmul.mubr.msk.bf16.gmra.mxu1 %vm473_vm1, %v1726_v21 }
  0x54   : > { %1600 = vmatprep.mubr.msk.bf16.mxu1 %vm473_vm1, %v1727_v23 }
  0x5b   : > { %1601 = vmatmul.mubr.msk.bf16.gmra.mxu1 %vm473_vm1, %v1728_v27 }
  0x5c   : > { %1604 = vmatprep.mubr.msk.bf16.mxu1 %vm473_vm1, %v1729_v15 }
  0x63   : > { %1605 = vmatmul.mubr.msk.bf16.gmra.mxu1 %vm473_vm1, %v1730_v16 }
  0x64   : > { %1608 = vmatprep.mubr.msk.bf16.mxu1 %vm473_vm1, %v1731_v18 }
  0x6b   : > { %1609 = vmatmul.mubr.msk.bf16.gmra.mxu1 %vm473_vm1, %v1732_v20 }
  0x6c   : > { %1612 = vmatprep.mubr.msk.bf16.mxu1 %vm473_vm1, %v1733_v22 }
  0x73   : > { %1613 = vmatmul.mubr.msk.bf16.gmra.mxu1 %vm473_vm1, %v1734_v25 }
  0x74   : > { %1616 = vmatprep.mubr.msk.bf16.mxu1 %vm473_vm1, %v1735_v26 }
  0x7b   : > { %1617 = vmatmul.mubr.msk.bf16.gmra.mxu1 %vm473_vm1, %v1736_v28 }
  0xe3   : > { %v1552_v33 = vpop.f32.mrf.mxu0  ;;  %v2026_v41 = vpop.f32.mrf.mxu1 }
  0xe4   : > { %v569_v39 = vadd.f32 %v1552_v33, %v2021_v35 }
  0xe5   : > { %v560_v34 = vpop.f32.mrf.mxu0  ;;  %v624_v45 = vpop.f32.mrf.mxu1 }
  0xe6   : > { %v561_v37 = vadd.f32 %v2021_v35, %v560_v34  ;;  %v689_v48 = vmax.f32 %v569_v39, 0.0  ;;  %v625_v23 = vadd.f32 %v2021_v35, %v624_v45 }
  0xe7   : > { %v1553_v36 = vpop.f32.mrf.mxu0  ;;  %v2029_v50 = vpop.f32.mrf.mxu1 }
  0xe8   : > { %v572_v38 = vadd.f32 %v1553_v36, %v2021_v35  ;;  %v687_v46 = vmax.f32 %v561_v37, 0.0  ;;  %v703_v32 = vmax.f32 %v625_v23, 0.0 }
  0xe9   : > { %v563_v40 = vpop.f32.mrf.mxu0  ;;  %v627_v54 = vpop.f32.mrf.mxu1 }
  0xea   : > { %v564_v42 = vadd.f32 %v2021_v35, %v563_v40  ;;  %v690_v43 = vmax.f32 %v572_v38, 0.0  ;;  %v628_v24 = vadd.f32 %v2021_v35, %v627_v54 }
  0xeb   : > { %v1556_v44 = vpop.f32.mrf.mxu0  ;;  %v2034_v59 = vpop.f32.mrf.mxu1 }
  0xec   : > { %v688_v47 = vmax.f32 %v564_v42, 0.0  ;;  %v720_v52 = vpack.c.bf16 %v690_v43, %v689_v48  ;;  %v585_v57 = vadd.f32 %v1556_v44, %v2021_v35  ;;  %v704_v34 = vmax.f32 %v628_v24, 0.0 }
  0xed   : > { %v576_v49 = vpop.f32.mrf.mxu0  ;;  %v640_v63 = vpop.f32.mrf.mxu1  ;;  %v636_v48 = vadd.f32 %v2029_v50, %v2021_v35 }
  0xee   : > { %v719_v51 = vpack.c.bf16 %v688_v47, %v687_v46  ;;  %v577_v55 = vadd.f32 %v2021_v35, %v576_v49  ;;  %v693_v2 = vmax.f32 %v585_v57, 0.0  ;;  %v727_v43 = vpack.c.bf16 %v704_v34, %v703_v32  ;;  %v2086_v34 = vld [vmem:[%s2246_s6] sm:$0x1] }
  0xef   : > { %v1557_v53 = vpop.f32.mrf.mxu0  ;;  %v1573_v4 = vpop.f32.mrf.mxu1  ;;  %v641_v44 = vadd.f32 %v2021_v35, %v640_v63  ;;  %v633_v46 = vadd.f32 %v2026_v41, %v2021_v35  ;;  %v706_v54 = vmax.f32 %v636_v48, 0.0  ;;  %v649_v41 = vadd.f32 %v2034_v59, %v2021_v35  ;;  %1542 = vmatprep.mubr.bf16.mxu1 %v2086_v34 }
  0xf0   : > { %v588_v56 = vadd.f32 %v1557_v53, %v2021_v35  ;;  %1636 = vmatprep.mubr.bf16.mxu0 %v719_v51  ;;  %v691_v0 = vmax.f32 %v577_v55, 0.0  ;;  %v652_v50 = vadd.f32 %v1573_v4, %v2021_v35 }
  0xf1   : > { %v579_v58 = vpop.f32.mrf.mxu0  ;;  %1637 = vmatmul.mubr.bf16.vlgmr.msra.gmra.mxu0 %v720_v52  ;;  %v643_v8 = vpop.f32.mrf.mxu1  ;;  %v707_v51 = vmax.f32 %v641_v44, 0.0  ;;  %v705_v53 = vmax.f32 %v633_v46, 0.0  ;;  %v1232_v46 = vld [vmem:[#allocation2] sm:$0x1] }
  0xf2   : > { %v580_v60 = vadd.f32 %v2021_v35, %v579_v58  ;;  %v694_v61 = vmax.f32 %v588_v56, 0.0  ;;  %v644_v45 = vadd.f32 %v2021_v35, %v643_v8 }
  0xf3   : > { %v1560_v62 = vpop.f32.mrf.mxu0  ;;  %v2040_v13 = vpop.f32.mrf.mxu1 }
  0xf4   : > { %v692_v1 = vmax.f32 %v580_v60, 0.0  ;;  %v722_v6 = vpack.c.bf16 %v694_v61, %v693_v2  ;;  %v601_v11 = vadd.f32 %v1560_v62, %v2021_v35  ;;  %v708_v52 = vmax.f32 %v644_v45, 0.0 }
  0xf5   : > { %v592_v3 = vpop.f32.mrf.mxu0  ;;  %v656_v17 = vpop.f32.mrf.mxu1  ;;  %v728_v60 = vpack.c.bf16 %v706_v54, %v705_v53  ;;  %v665_v8 = vadd.f32 %v2040_v13, %v2021_v35 }
  0xf6   : > { %v721_v5 = vpack.c.bf16 %v692_v1, %v691_v0  ;;  %v593_v9 = vadd.f32 %v2021_v35, %v592_v3  ;;  %v697_v20 = vmax.f32 %v601_v11, 0.0  ;;  %v729_v56 = vpack.c.bf16 %v708_v52, %v707_v51 }
  0xf7   : > { %v1561_v7 = vpop.f32.mrf.mxu0  ;;  %v1577_v27 = vpop.f32.mrf.mxu1  ;;  %v657_v57 = vadd.f32 %v2021_v35, %v656_v17  ;;  %v709_v0 = vmax.f32 %v649_v41, 0.0  ;;  %v710_v1 = vmax.f32 %v652_v50, 0.0 }
  0xf8   : > { %v604_v10 = vadd.f32 %v1561_v7, %v2021_v35  ;;  %1640 = vmatprep.mubr.bf16.mxu0 %v721_v5  ;;  %v695_v18 = vmax.f32 %v593_v9, 0.0  ;;  %v668_v59 = vadd.f32 %v1577_v27, %v2021_v35 }
  0xf9   : > { %v595_v12 = vpop.f32.mrf.mxu0  ;;  %1641 = vmatmul.mubr.bf16.gmra.mxu0 %v722_v6  ;;  %v659_v37 = vpop.f32.mrf.mxu1  ;;  %v711_v62 = vmax.f32 %v657_v57, 0.0  ;;  %v730_v7 = vpack.c.bf16 %v710_v1, %v709_v0 }
  0xfa   : > { %v596_v14 = vadd.f32 %v2021_v35, %v595_v12  ;;  %v698_v15 = vmax.f32 %v604_v10, 0.0  ;;  %v660_v58 = vadd.f32 %v2021_v35, %v659_v37  ;;  %v713_v10 = vmax.f32 %v665_v8, 0.0 }
  0xfb   : > { %v1564_v16 = vpop.f32.mrf.mxu0  ;;  %v1580_v49 = vpop.f32.mrf.mxu1  ;;  %v714_v11 = vmax.f32 %v668_v59, 0.0 }
  0xfc   : > { %v696_v19 = vmax.f32 %v596_v14, 0.0  ;;  %v724_v25 = vpack.c.bf16 %v698_v15, %v697_v20  ;;  %v617_v30 = vadd.f32 %v1564_v16, %v2021_v35  ;;  %v712_v63 = vmax.f32 %v660_v58, 0.0 }
  0xfd   : > { %v608_v21 = vpop.f32.mrf.mxu0  ;;  %v672_v55 = vpop.f32.mrf.mxu1  ;;  %v732_v14 = vpack.c.bf16 %v714_v11, %v713_v10  ;;  %v681_v15 = vadd.f32 %v1580_v49, %v2021_v35  ;;  %v1810_v49 = vmov 0  }
  0xfe   : > { %v723_v22 = vpack.c.bf16 %v696_v19, %v695_v18  ;;  %v609_v28 = vadd.f32 %v2021_v35, %v608_v21  ;;  %v701_v40 = vmax.f32 %v617_v30, 0.0  ;;  %v731_v3 = vpack.c.bf16 %v712_v63, %v711_v62  ;;  %1717 = vset.pattern.permute.xlu0 %v1810_v49 }
  0xff   : > { %v1565_v26 = vpop.f32.mrf.mxu0  ;;  %v1581_v61 = vpop.f32.mrf.mxu1  ;;  %v673_v5 = vadd.f32 %v2021_v35, %v672_v55  ;;  %v717_v17 = vmax.f32 %v681_v15, 0.0  ;;  %1235 = vperm.xlu0 %1717, %v1232_v46  }
 0x100   : > { %v620_v29 = vadd.f32 %v1565_v26, %v2021_v35  ;;  %1644 = vmatprep.mubr.bf16.mxu0 %v723_v22  ;;  %v699_v38 = vmax.f32 %v609_v28, 0.0  ;;  %v684_v16 = vadd.f32 %v1581_v61, %v2021_v35 }
 0x101   : > { %v611_v31 = vpop.f32.mrf.mxu0  ;;  %1645 = vmatmul.mubr.bf16.gmra.mxu0 %v724_v25  ;;  %v675_v2 = vpop.f32.mrf.mxu1  ;;  %v715_v4 = vmax.f32 %v673_v5, 0.0 }
 0x102   : > { %v612_v33 = vadd.f32 %v2021_v35, %v611_v31  ;;  %v702_v36 = vmax.f32 %v620_v29, 0.0  ;;  %v676_v6 = vadd.f32 %v2021_v35, %v675_v2  ;;  %v718_v18 = vmax.f32 %v684_v16, 0.0 }
 0x103   : > { %v1590_v13 = vpop.f32.mrf.mxu1 }
 0x104   : > { %v700_v39 = vmax.f32 %v612_v33, 0.0  ;;  %v726_v47 = vpack.c.bf16 %v702_v36, %v701_v40  ;;  %v716_v9 = vmax.f32 %v676_v6, 0.0  ;;  %v734_v19 = vpack.c.bf16 %v718_v18, %v717_v17 }
 0x105   : > { %v808_v20 = vpop.f32.mrf.mxu1 }
 0x106   : > { %v725_v42 = vpack.c.bf16 %v700_v39, %v699_v38  ;;  %v733_v12 = vpack.c.bf16 %v716_v9, %v715_v4  ;;  %v2092_v38 = vld [vmem:[%s2245_s5] ss:$0 sm:$0xff] }
 0x107   : > { %v1591_v21 = vpop.f32.mrf.mxu1 }
 0x108   : > { %1648 = vmatprep.mubr.bf16.mxu0 %v725_v42 }
 0x109   : > { %1649 = vmatmul.mubr.bf16.gmra.mxu0 %v726_v47  ;;  %v811_v22 = vpop.f32.mrf.mxu1 }
 0x10a   : > { %1652 = vmatprep.mubr.bf16.mxu0 %v727_v43 }
 0x10b   : > { %v1594_v23 = vpop.f32.mrf.mxu1 }
 0x10d   : > { %v824_v24 = vpop.f32.mrf.mxu1 }
 0x10f   : > { %v1595_v25 = vpop.f32.mrf.mxu1 }
 0x111   : > { %1653 = vmatmul.mubr.bf16.gmra.mxu0 %v728_v60  ;;  %v827_v26 = vpop.f32.mrf.mxu1 }
 0x112   : > { %1656 = vmatprep.mubr.bf16.mxu0 %v729_v56 }
 0x113   : > { %v2067_v27 = vpop.f32.mrf.mxu1 }
 0x115   : > { %v2069_v28 = vpop.f32.mrf.mxu1 }
 0x117   : > { %v2071_v29 = vpop.f32.mrf.mxu1 }
 0x119   : > { %1657 = vmatmul.mubr.bf16.gmra.mxu0 %v730_v7  ;;  %v2073_v35 = vpop.f32.mrf.mxu1 }
 0x11a   : > { %1660 = vmatprep.mubr.bf16.mxu0 %v731_v3 }
 0x11b   : > { %v2075_v30 = vpop.f32.mrf.mxu1 }
 0x11d   : > { %v2077_v31 = vpop.f32.mrf.mxu1 }
 0x11f   : > { %v2079_v32 = vpop.f32.mrf.mxu1 }
 0x121   : > { %1661 = vmatmul.mubr.bf16.gmra.mxu0 %v732_v14  ;;  %v2081_v33 = vpop.f32.mrf.mxu1 }
 0x122   : > { %1664 = vmatprep.mubr.bf16.mxu0 %v733_v12 }
 0x123   : > { %v1606_v40 = vpop.f32.mrf.mxu1 }
 0x125   : > { %v872_v48 = vpop.f32.mrf.mxu1 }
 0x127   : > { %v1607_v41 = vpop.f32.mrf.mxu1 }
 0x129   : > { %1665 = vmatmul.mubr.bf16.gmra.mxu0 %v734_v19  ;;  %v875_v6 = vpop.f32.mrf.mxu1 }
 0x12b   : > { %v2110_v14 = vpop.f32.mrf.mxu1 }
 0x1b1   : > { %v1638_v36 = vpop.f32.mrf.mxu0 }
 0x1b2   : > { %v1026_v37 = vadd.f32 %v1638_v36, %v1590_v13 }
 0x1b3   : > { %v1017_v39 = vpop.f32.mrf.mxu0 }
 0x1b4   : > { %v1018_v42 = vadd.f32 %v1017_v39, %v808_v20  ;;  %v1153_v44 = vadd.f32 %v2092_v38, %v1026_v37  ;;  %v2120_v20 = vpop.f32.mrf.mxu1 }
 0x1b5   : > { %v1639_v43 = vpop.f32.mrf.mxu0 }
 0x1b6   : > { %v1029_v45 = vadd.f32 %v1639_v43, %v1591_v21  ;;  %v1151_v51 = vadd.f32 %v2092_v38, %v1018_v42  ;;  %v1185_v55 = vmax.f32 %v1153_v44, 0.0 }
 0x1b7   : > { %v1020_v47 = vpop.f32.mrf.mxu0 }
 0x1b8   : > { %v1154_v52 = vadd.f32 %v2092_v38, %v1029_v45  ;;  %v1021_v53 = vadd.f32 %v1020_v47, %v811_v22  ;;  %v1183_v50 = vmax.f32 %v1151_v51, 0.0 }
 0x1b9   : > { %v1642_v54 = vpop.f32.mrf.mxu0 }
 0x1ba   : > { %v1186_v56 = vmax.f32 %v1154_v52, 0.0  ;;  %v1152_v57 = vadd.f32 %v2092_v38, %v1021_v53  ;;  %v1042_v58 = vadd.f32 %v1642_v54, %v1594_v23  ;;  %v2122_v23 = vpop.f32.mrf.mxu1 }
 0x1bb   : > { %v1033_v60 = vpop.f32.mrf.mxu0 }
 0x1bc   : > { %v2098_v61 = vpack.c.bf16 %v1186_v56, %v1185_v55  ;;  %v1184_v62 = vmax.f32 %v1152_v57, 0.0  ;;  %v1034_v63 = vadd.f32 %v1033_v60, %v824_v24  ;;  %v1157_v2 = vadd.f32 %v2092_v38, %v1042_v58 }
 0x1bd   : > { %v1643_v0 = vpop.f32.mrf.mxu0 }
 0x1be   : > { %v2100_v1 = vpack.c.bf16 %v1184_v62, %v1183_v50  ;;  %v1045_v3 = vadd.f32 %v1643_v0, %v1595_v25  ;;  %v1155_v7 = vadd.f32 %v2092_v38, %v1034_v63  ;;  %v1189_v9 = vmax.f32 %v1157_v2, 0.0 }
 0x1bf   : > { %v1036_v5 = vpop.f32.mrf.mxu0 }
 0x1c0   : > { %v1158_v8 = vadd.f32 %v2092_v38, %v1045_v3  ;;  %v1037_v59 = vadd.f32 %v1036_v5, %v827_v26  ;;  %v1187_v15 = vmax.f32 %v1155_v7, 0.0  ;;  %v2124_v26 = vpop.f32.mrf.mxu1 }
 0x1c1   : > { %v2105_v4 = vpop.f32.mrf.mxu0 }
 0x1c2   : > { %v1190_v10 = vmax.f32 %v1158_v8, 0.0  ;;  %v1156_v11 = vadd.f32 %v2092_v38, %v1037_v59  ;;  %v1614_v42 = vpop.f32.mrf.mxu1 }
 0x1c3   : > { %v2108_v12 = vpop.f32.mrf.mxu0 }
 0x1c4   : > { %v2112_v16 = vpack.c.bf16 %v1190_v10, %v1189_v9  ;;  %v1188_v17 = vmax.f32 %v1156_v11, 0.0  ;;  %v2127_v49 = vpop.f32.mrf.mxu1 }
 0x1c5   : > { %v2114_v18 = vpop.f32.mrf.mxu0 }
 0x1c6   : > { %v2116_v19 = vpack.c.bf16 %v1188_v17, %v1187_v15 }
 0x1c7   : > { %v2118_v13 = vpop.f32.mrf.mxu0 }
 0x1c9   : > { %v1650_v21 = vpop.f32.mrf.mxu0 }
 0x1ca   : > { %v1074_v11 = vadd.f32 %v1650_v21, %v2075_v30 }
 0x1cb   : > { %v1065_v22 = vpop.f32.mrf.mxu0 }
 0x1cd   : > { %v1651_v24 = vpop.f32.mrf.mxu0 }
 0x1ce   : > { %v1077_v59 = vadd.f32 %v1651_v24, %v2079_v32 }
 0x1cf   : > { %v1068_v25 = vpop.f32.mrf.mxu0 }
 0x1d0   : > { %v1069_v30 = vadd.f32 %v1068_v25, %v2081_v33 }
 0x1d1   : > { %v1654_v36 = vpop.f32.mrf.mxu0 }
 0x1d2   : > { %v1090_v37 = vadd.f32 %v1654_v36, %v1606_v40 }
 0x1d3   : > { %v1081_v39 = vpop.f32.mrf.mxu0 }
 0x1d4   : > { %v1082_v43 = vadd.f32 %v1081_v39, %v872_v48  ;;  %v1169_v45 = vadd.f32 %v2092_v38, %v1090_v37  ;;  %v1615_v48 = vpop.f32.mrf.mxu1  ;;  %v1166_v37 = vadd.f32 %v2092_v38, %v1077_v59 }
 0x1d5   : > { %v1655_v44 = vpop.f32.mrf.mxu0 }
 0x1d6   : > { %v1093_v46 = vadd.f32 %v1655_v44, %v1607_v41  ;;  %v1167_v51 = vadd.f32 %v2092_v38, %v1082_v43  ;;  %v1201_v55 = vmax.f32 %v1169_v45, 0.0  ;;  %v907_v0 = vpop.f32.mrf.mxu1  ;;  %v1165_v45 = vadd.f32 %v2092_v38, %v1074_v11 }
 0x1d7   : > { %v1084_v47 = vpop.f32.mrf.mxu0 }
 0x1d8   : > { %v1170_v52 = vadd.f32 %v2092_v38, %v1093_v46  ;;  %v1085_v53 = vadd.f32 %v1084_v47, %v875_v6  ;;  %v1199_v58 = vmax.f32 %v1167_v51, 0.0  ;;  %v1618_v3 = vpop.f32.mrf.mxu1 }
 0x1d9   : > { %v2131_v54 = vpop.f32.mrf.mxu0 }
 0x1da   : > { %v1202_v56 = vmax.f32 %v1170_v52, 0.0  ;;  %v1168_v40 = vadd.f32 %v2092_v38, %v1085_v53  ;;  %v920_v7 = vpop.f32.mrf.mxu1  ;;  %v1198_v52 = vmax.f32 %v1166_v37, 0.0 }
 0x1db   : > { %v2134_v57 = vpop.f32.mrf.mxu0 }
 0x1dc   : > { %v1200_v60 = vmax.f32 %v1168_v40, 0.0  ;;  %v2136_v41 = vpack.c.bf16 %v1202_v56, %v1201_v55  ;;  %v1619_v15 = vpop.f32.mrf.mxu1  ;;  %v1197_v40 = vmax.f32 %v1165_v45, 0.0 }
 0x1dd   : > { %v2138_v50 = vpop.f32.mrf.mxu0 }
 0x1de   : > { %v2140_v62 = vpack.c.bf16 %v1200_v60, %v1199_v58  ;;  %v923_v46 = vpop.f32.mrf.mxu1  ;;  %v1066_v58 = vadd.f32 %v1065_v22, %v2077_v31  ;;  %v1061_v31 = vadd.f32 %v2114_v18, %v2071_v29 }
 0x1df   : > { %v2142_v63 = vpop.f32.mrf.mxu0 }
 0x1e0   : > { %v1163_v33 = vadd.f32 %v2092_v38, %v1066_v58  ;;  %v1162_v37 = vadd.f32 %v2092_v38, %v1061_v31 }
 0x1e1   : > { %v1662_v2 = vpop.f32.mrf.mxu0 }
 0x1e2   : > { %v1122_v60 = vadd.f32 %v1662_v2, %v1614_v42  ;;  %v1058_v2 = vadd.f32 %v2105_v4, %v2067_v27  ;;  %v1194_v18 = vmax.f32 %v1162_v37, 0.0  ;;  %v1053_v27 = vadd.f32 %v2118_v13, %v2073_v35 }
 0x1e3   : > { %v1113_v5 = vpop.f32.mrf.mxu0  ;;  %v1109_v4 = vadd.f32 %v2138_v50, %v2122_v23 }
 0x1e4   : > { %v1177_v25 = vadd.f32 %v2092_v38, %v1122_v60  ;;  %v1161_v45 = vadd.f32 %v2092_v38, %v1058_v2 }
 0x1e5   : > { %v1663_v6 = vpop.f32.mrf.mxu0 }
 0x1e6   : > { %v1125_v21 = vadd.f32 %v1663_v6, %v1615_v48  ;;  %v1195_v6 = vmax.f32 %v1163_v33, 0.0 }
 0x1e7   : > { %v1116_v8 = vpop.f32.mrf.mxu0 }
 0x1e8   : > { %v1178_v11 = vadd.f32 %v2092_v38, %v1125_v21  ;;  %v1117_v48 = vadd.f32 %v1116_v8, %v907_v0  ;;  %v1193_v0 = vmax.f32 %v1161_v45, 0.0  ;;  %v1106_v8 = vadd.f32 %v2131_v54, %v2110_v14 }
 0x1e9   : > { %v1666_v9 = vpop.f32.mrf.mxu0  ;;  %v1098_v54 = vadd.f32 %v2134_v57, %v2120_v20  ;;  %v1811_v57 = vmov 1966171168  }
 0x1ea   : > { %v1138_v10 = vadd.f32 %v1666_v9, %v1618_v3  ;;  %v1223_v9 = vpack.c.bf16 %v1198_v52, %v1197_v40  ;;  %v1210_v42 = vmax.f32 %v1178_v11, 0.0  ;;  %v1173_v13 = vadd.f32 %v2092_v38, %v1106_v8 }
 0x1eb   : > { %v1129_v17 = vpop.f32.mrf.mxu0 }
 0x1ec   : > { %v1130_v36 = vadd.f32 %v1129_v17, %v920_v7  ;;  %v1181_v43 = vadd.f32 %v2092_v38, %v1138_v10  ;;  %v1164_v10 = vadd.f32 %v2092_v38, %v1069_v30  ;;  %v1209_v17 = vmax.f32 %v1177_v25, 0.0 }
 0x1ed   : > { %v1667_v39 = vpop.f32.mrf.mxu0  ;;  %v1205_v14 = vmax.f32 %v1173_v13, 0.0 }
 0x1ee   : > { %v1141_v44 = vadd.f32 %v1667_v39, %v1619_v15  ;;  %v1179_v51 = vadd.f32 %v2092_v38, %v1130_v36  ;;  %v1213_v53 = vmax.f32 %v1181_v43, 0.0  ;;  %v1196_v22 = vmax.f32 %v1164_v10, 0.0 }
 0x1ef   : > { %v1132_v47 = vpop.f32.mrf.mxu0  ;;  %v1114_v36 = vadd.f32 %v1113_v5, %v2127_v49  ;;  %v1176_v43 = vadd.f32 %v2092_v38, %v1117_v48  ;;  %v1050_v5 = vadd.f32 %v2108_v12, %v2069_v28  ;;  %v1101_v28 = vadd.f32 %v2142_v63, %v2124_v26 }
 0x1f0   : > { %v1182_v32 = vadd.f32 %v2092_v38, %v1141_v44  ;;  %v1133_v24 = vadd.f32 %v1132_v47, %v923_v46  ;;  %v1211_v3 = vmax.f32 %v1179_v51, 0.0  ;;  %v1222_v39 = vpack.c.bf16 %v1196_v22, %v1195_v6 }
 0x1f1   : > { %v1229_v44 = vpack.c.bf16 %v1210_v42, %v1209_v17  ;;  %v1175_v29 = vadd.f32 %v2092_v38, %v1114_v36  ;;  %v1208_v49 = vmax.f32 %v1176_v43, 0.0  ;;  %v1221_v47 = vpack.c.bf16 %v1194_v18, %v1193_v0 }
 0x1f2   : > { %v1214_v55 = vmax.f32 %v1182_v32, 0.0  ;;  %v1180_v56 = vadd.f32 %v2092_v38, %v1133_v24  ;;  %v1160_v51 = vadd.f32 %v2092_v38, %v1053_v27  ;;  %v1174_v32 = vadd.f32 %v2092_v38, %v1109_v4 }
 0x1f3   : > { %v1207_v46 = vmax.f32 %v1175_v29, 0.0  ;;  %v1159_v35 = vadd.f32 %v2092_v38, %v1050_v5  ;;  %v1172_v30 = vadd.f32 %v2092_v38, %v1101_v28  ;;  %v1287_v63 = vunpack.c.l.s4 %v1811_v57 }
 0x1f4   : > { %v1212_v7 = vmax.f32 %v1180_v56, 0.0  ;;  %v1231_v59 = vpack.c.bf16 %v1214_v55, %v1213_v53  ;;  %v1192_v23 = vmax.f32 %v1160_v51, 0.0  ;;  %v1206_v50 = vmax.f32 %v1174_v32, 0.0 }
 0x1f5   : > { %v1228_v24 = vpack.c.bf16 %v1208_v49, %v1207_v46  ;;  %v1191_v12 = vmax.f32 %v1159_v35, 0.0  ;;  %v1171_v53 = vadd.f32 %v2092_v38, %v1098_v54  ;;  %v1204_v55 = vmax.f32 %v1172_v30, 0.0 }
 0x1f6   : > { %1526 = vmatprep.subr.bf16.mxu1 %v1231_v59  ;;  %v1230_v15 = vpack.c.bf16 %v1212_v7, %v1211_v3  ;;  %v1227_v21 = vpack.c.bf16 %v1206_v50, %v1205_v14  ;;  %v1238_v38 = vlaneseq  ;;  %v1288_v60 = vunpack.c.0.s8 %v1287_v63 }
 0x1f7   : > { %1527 = vmatpush3.bf16.xpose.msra.mxu1 %v1223_v9  ;;  %v1220_v52 = vpack.c.bf16 %v1192_v23, %v1191_v12  ;;  %v1203_v56 = vmax.f32 %v1171_v53, 0.0 }
 0x1f8   : > { %1528 = vmatprep.subr.bf16.mxu1 %v1230_v15  ;;  %v1239_v20 = vshrl.u32 %v1238_v38, 7  ;;  %vm1303_vm2 = vcmp.lt.s32.totalorder %v1238_v38, 256 }
 0x1f9   : > { %v1226_v40 = vpack.c.bf16 %v1204_v55, %v1203_v56 }
 0x1fa   : > { %v1240_v26 = vsub.s32 0, %v1239_v20 }
 0x1ff   : > { %1529 = vmatpush3.bf16.xpose.msra.mxu1 %v1222_v39 }
 0x200   : > { %1530 = vmatprep.subr.bf16.mxu1 %v1229_v44 }
 0x207   : > { %1531 = vmatpush3.bf16.xpose.msra.mxu1 %v1221_v47 }
 0x208   : > { %1532 = vmatprep.subr.bf16.mxu1 %v1228_v24 }
 0x20f   : > { %1533 = vmatpush3.bf16.xpose.msra.mxu1 %v1220_v52 }
 0x210   : > { %1534 = vmatprep.subr.bf16.mxu1 %v1227_v21 }
 0x217   : > { %1535 = vmatpush3.bf16.xpose.msra.mxu1 %v2112_v16  ;;  %v1236_v16 = vpop.permute.xlu0 %1235 }
 0x218   : > { %1536 = vmatprep.subr.bf16.mxu1 %v1226_v40  ;;  %v1241_v58 = vrot.slane %v1236_v16, %v1240_v26 }
 0x21f   : > { %1537 = vmatpush3.bf16.xpose.msra.mxu1 %v2116_v19 }
 0x220   : > { %1538 = vmatprep.subr.bf16.mxu1 %v2136_v41 }
 0x227   : > { %1539 = vmatpush3.bf16.xpose.msra.mxu1 %v2098_v61  ;;  %v1291_v61 = vsub.s32 %v1288_v60, %v1239_v20 }
 0x228   : > { %1540 = vmatprep.subr.bf16.mxu1 %v2140_v62 }
 0x22f   : > { %1541 = vmatpush3.bf16.xpose.msra.mxu1 %v2100_v1 }
 0x236   : > { %1543 = vmatmul.mubr.bf16.vlgmr.msra.gmra.mxu1 %v2086_v34 }
 0x2f6   : > { %v1276_v19 = vpop.f32.mrf.mxu1 }
 0x2f7   : > { %v1277_v41 = vadd.f32 %v1276_v19, %v1241_v58 }
 0x2f8   : > { %v1278_v3 = vpop.f32.mrf.mxu1 }
 0x2f9   : > { %v1279_v7 = vadd.f32 %v1278_v3, %v1241_v58 }
 0x2fa   : > { %v1280_v59 = vpop.f32.mrf.mxu1 }
 0x2fb   : > { %v1285_v62 = vcombine.low %v1277_v41, %v1279_v7 }
 0x2fc   : > { %v1281_v1 = vpop.f32.mrf.mxu1 }
 0x2fd   : > { %v1292_v9 = vrot.slane %v1285_v62, %v1291_v61  ;;  %1313 = sbr.rel (!%p1899_p5) target bundleno = 796 (0x31c), region = 56 }
 0x2ff   : > { %v1299_v34 = vrot.slane %v1292_v9, %v1291_v61 }
 0x301   : > { %1305 = vst.msk [vmem:[%s313_s21] sm:$0x3] %vm1303_vm2, %v1299_v34 }
 0x302   : > { %s2256_s14 = smov (!%p1316_p11, %s1315_s14), 2 }
 0x303   : > { %s2198_s25 = sshll.u32 %s2256_s14, 4 }
 0x304   : > { %s1320_s26 = ssub.s32 32, %s2198_s25 }
 0x305   : > { %1321 = vsyncadd %s2193_s23, %s1320_s26  ;;  %p1459_p12 = scmp.ne.s32.totalorder %s2198_s25, 0  ;;  %s1324_s16 = scalar_lea.hbm %s2248_s8, %s1918_s22 }
 0x306   : > { %s1326_s11 = sshll.u32 %s313_s21, 4  ;;  %s1812_s13 = smov [#allocation3]   ;;  %s1327_s11 = int_to_ptr.vmem [resolvable:$true] %s1326_s11 }
 0x307   : > { %s1748_s7 = scalar_lea.vmem %s1327_s11, %s2198_s25  ;;  %s1752_s18 = sshll.u32 %s1812_s13, 4  ;;  %s1753_s18 = int_to_ptr.vmem [resolvable:$false] %s1752_s18 }
 0x308   : > { %p1749_p13 = scmp.ne.s32.totalorder %s1327_s11, %s1748_s7  ;;  %s1754_s19 = scalar_lea.vmem %s1753_s18, 64 }
 0x309   : > { %p1755_p2 = scmp.lt.s32.totalorder %s1327_s11, %s1753_s18  ;;  %p1756_p3 = scmp.lt.s32.totalorder %s1754_s19, %s1748_s7 }
 0x30a   : > { %p1750_p0 = pnand %p1749_p13, %p1459_p12 }
 0x30b   : > { %p1757_p4 = por %p1756_p3, %p1755_p2 }
 0x30c   : > { %p1751_p1 = pneg %p1750_p0 }
 0x30e   : > { %p1758_p5 = pnand %p1757_p4, %p1751_p1 }
 0x310   : > { %1761 = shalt.err (!%p1758_p5)
}
 0x311   : > { %s1762_s20 = scalar_lea.hbm %s1324_s16, %s2198_s25  ;;  %s1766_s24 = scalar_lea.hbm %s2248_s8, 48 }
 0x312   : > { %p1763_p7 = scmp.ne.s32.totalorder %s1324_s16, %s1762_s20  ;;  %p1767_p10 = scmp.lt.s32.totalorder %s1324_s16, %s2248_s8 }
 0x313   : > { %p1768_p11 = scmp.lt.s32.totalorder %s1766_s24, %s1762_s20 }
 0x314   : > { %p1764_p8 = pnand %p1763_p7, %p1459_p12 }
 0x315   : > { %p1769_p13 = por %p1768_p11, %p1767_p10 }
 0x316   : > { %p1765_p9 = pneg %p1764_p8 }
 0x318   : > { %p1770_p0 = pnand %p1769_p13, %p1765_p9 }
 0x31a   : > { %1773 = shalt.err (!%p1770_p0)
}
 0x31b   : > { %1329 = dma.vmem_to_hbm [thread:$0]  (%p1459_p12), %s1327_s11, %s2198_s25, %s1324_s16, %s2193_s23  }
 0x31c PF: > { %p1682_p1 = scmp.ge.s32.totalorder %s1808_s10, 2  ;;  %s1338_s27 = sand.u32 1, %s1796_s29  }
 0x31d   : > { %s1339_s28 = scalar_lea.sflag [#allocation4], %s1338_s27 }
 0x31e   : > { %p1679_p2 = pnand %p1682_p1, %p1903_p6 }
 0x320   : > { %p1680_p3 = pneg %p1679_p2 }
 0x322   : > { %1791 = dma.done.wait (%p1680_p3), %s1339_s28, 32  }
 0x323   : > { %1793 = vsyncadd (%p1680_p3), %s1339_s28, 4294967264  ;;  %p20_p4 = scmp.ge.s32.totalorder %s1886_s12, 4   ;;  %s2251_s29 = smov %s1800_s30 }
 0x324   : > { %s2252_s30 = smov %s1804_s9  ;;  %s2253_s9 = smov %s1897_s15 }
 0x325   : > { %s2254_s10 = smov %s1886_s12  ;;  %22 = sbr.rel (!%p20_p4) target bundleno = 6 (0x6), region = 87 }
 0x32a   :  { %1344 = vsyncpa [#allocation4], 1 }
 0x32b   :  { %1346 = vsyncpa [#allocation4 + $0x1], 1 }

</bundles_post_ra>
